<compile_context>
chip_gen: v7x
topology: tpu7x:2x2x1
jax: 0.10.0
libtpu: 0.0.40
codegen_flags: <defaults>
</compile_context>

<pallas_src>
import functools
import math

import jax
import jax.numpy as jnp
from jax.experimental import pallas as pl
from jax.experimental.pallas import tpu as pltpu


N_BLOCK = 128  # output-lane tile: full-lane stores + parallel axis for v7x


def _linear_kernel(x_ref, w_ref, b_ref, o_ref):
    # x_ref: (B, K)       flattened batch (constant across the grid)
    # w_ref: (1, K, NB)   contiguous weight slab for this output block
    # b_ref: (1, NB)      matching bias slice
    # o_ref: (B, NB)
    o_ref[...] = (
        jnp.dot(x_ref[...], w_ref[0], preferred_element_type=jnp.float32)
        + b_ref[...]
    ).astype(o_ref.dtype)


def prepare_params(weight, bias, n_block=N_BLOCK):
    """One-time parameter prep (call OUTSIDE the jitted forward).

    weight: (N, K) PyTorch nn.Linear layout (out_features, in_features)
    bias:   (N,)
    Returns:
      w_blocks: (G, K, n_block) float32, zero-padded along N; each output
                block's weight is contiguous in HBM (one clean DMA per step).
      b_pad:    (1, G * n_block) float32, zero-padded.
    """
    n_out, k_in = weight.shape
    g = (n_out + n_block - 1) // n_block
    n_pad = g * n_block
    w_kn = jnp.zeros((k_in, n_pad), weight.dtype).at[:, :n_out].set(weight.T)
    w_blocks = w_kn.reshape(k_in, g, n_block).transpose(1, 0, 2)
    b_pad = jnp.zeros((1, n_pad), bias.dtype).at[0, :n_out].set(bias)
    return w_blocks, b_pad


@functools.partial(jax.jit, static_argnames=("n_out",))
def simple_model_forward(x, w_blocks, b_pad, *, n_out):
    """y = flatten(x) @ W.T + b   (PyTorch SimpleModel.forward)

    x:        (B, C, H, W) float32  (NCHW, like PyTorch)
    w_blocks: (G, K, NB) float32    from prepare_params
    b_pad:    (1, G*NB) float32     from prepare_params
    returns   (B, n_out) float32
    """
    B = x.shape[0]
    K = math.prod(x.shape[1:])
    G, Kw, NB = w_blocks.shape
    assert Kw == K, f"weight K ({Kw}) != flattened input K ({K})"
    n_pad = G * NB

    x2d = x.reshape(B, K)  # row-major flatten == torch.nn.Flatten

    out = pl.pallas_call(
        _linear_kernel,
        out_shape=jax.ShapeDtypeStruct((B, n_pad), x.dtype),
        grid_spec=pltpu.PrefetchScalarGridSpec(
            num_scalar_prefetch=0,
            grid=(G,),
            in_specs=[
                # Flattened activations: small, constant block across the grid
                # (block == full array, so no lane/sublane alignment needed).
                pl.BlockSpec((B, K), lambda n: (0, 0)),
                # Per-output-block weight slab (one contiguous DMA per step).
                pl.BlockSpec((1, K, NB), lambda n: (n, 0, 0)),
                # Matching bias slice.
                pl.BlockSpec((1, NB), lambda n: (0, n)),
            ],
            out_specs=pl.BlockSpec((B, NB), lambda n: (0, n)),
        ),
        compiler_params=pltpu.CompilerParams(
            # Independent output blocks -> shard across TensorCores on v7x.
            dimension_semantics=("parallel",),
            # Double-buffered weight slabs + activations; plenty of headroom
            # under physical VMEM on v5e/v6e (128 MiB) and v7x (64 MiB).
            vmem_limit_bytes=32 * 1024 * 1024,
        ),
    )(x2d, w_blocks, b_pad)

    # Drop the zero-padded output columns.
    return out[:, :n_out]


if __name__ == "__main__":
    # Small, module-consistent shapes: flatten(2, 4, 16, 16) -> (2, 1024),
    # Linear(1024 -> 360).  (The full-size module, 64*64*3 -> 360, uses the
    # exact same kernel with G = 3 output blocks.)
    B, C, H, W = 2, 4, 16, 16
    N_OUT = 360
    K_IN = C * H * W

    key = jax.random.PRNGKey(0)
    kx, kw, kb = jax.random.split(key, 3)

    bound = 1.0 / (K_IN ** 0.5)
    x = jax.random.normal(kx, (B, C, H, W), dtype=jnp.float32)
    weight = jax.random.uniform(kw, (N_OUT, K_IN), minval=-bound, maxval=bound,
                                dtype=jnp.float32)
    bias = jax.random.uniform(kb, (N_OUT,), minval=-bound, maxval=bound,
                              dtype=jnp.float32)

    # One-time parameter prep (outside the jitted forward / hot path).
    w_blocks, b_pad = prepare_params(weight, bias)
    w_blocks, b_pad = jax.block_until_ready((w_blocks, b_pad))

    out = simple_model_forward(x, w_blocks, b_pad, n_out=N_OUT)
    out = jax.block_until_ready(out)

    # Sanity check against plain-JAX reference of the PyTorch forward.
    ref = x.reshape(B, K_IN) @ weight.T + bias
    assert out.shape == (B, N_OUT)
    assert jnp.allclose(out, ref, atol=1e-4, rtol=1e-4)

    print("KERNEL_OK")
</pallas_src>

<mosaic_0001>
module attributes {stable_mosaic.version = 11 : i64} {
  func.func @_linear_kernel(%arg0: i32, %arg1: memref<2x1024xf32, #tpu.memory_space<vmem>>, %arg2: memref<1x1024x128xf32, #tpu.memory_space<vmem>>, %arg3: memref<1x128xf32, #tpu.memory_space<vmem>>, %arg4: memref<2x128xf32, #tpu.memory_space<vmem>>) attributes {dimension_semantics = [#tpu.dimension_semantics<parallel>], iteration_bounds = array<i64: 3>, scalar_prefetch = 0 : i64, scratch_operands = 0 : i64, tpu.core_type = #tpu.core_type<tc>, window_params = [{pipeline_mode = #tpu.pipeline_mode<synchronous>, transform_indices = @transform_0, window_bounds = array<i64: 2, 1024>}, {transform_indices = @transform_1, window_bounds = array<i64: 1, 1024, 128>}, {transform_indices = @transform_2, window_bounds = array<i64: 1, 128>}, {transform_indices = @transform_3, window_bounds = array<i64: 2, 128>}]} {
    %c0 = arith.constant 0 : index
    %c0_0 = arith.constant 0 : index
    %0 = vector.load %arg1[%c0, %c0_0] : memref<2x1024xf32, #tpu.memory_space<vmem>>, vector<2x1024xf32>
    %c0_1 = arith.constant 0 : index
    %c0_2 = arith.constant 0 : index
    %c0_3 = arith.constant 0 : index
    %1 = vector.load %arg2[%c0_1, %c0_2, %c0_3] : memref<1x1024x128xf32, #tpu.memory_space<vmem>>, vector<1x1024x128xf32>
    %2 = vector.shape_cast %1 : vector<1x1024x128xf32> to vector<1024x128xf32>
    %cst = arith.constant dense<0.000000e+00> : vector<2x128xf32>
    %3 = tpu.matmul %0, %2, %cst {dimension_numbers = #tpu.dot_dimension_numbers<[1], [0], [0], [1], [0, 0, 1, 1], [], []>} : vector<2x1024xf32>, vector<1024x128xf32>, vector<2x128xf32> -> vector<2x128xf32>
    %c0_4 = arith.constant 0 : index
    %c0_5 = arith.constant 0 : index
    %4 = vector.load %arg3[%c0_4, %c0_5] : memref<1x128xf32, #tpu.memory_space<vmem>>, vector<1x128xf32>
    %5 = vector.broadcast %4 : vector<1x128xf32> to vector<2x128xf32>
    %6 = arith.addf %3, %5 : vector<2x128xf32>
    %c0_6 = arith.constant 0 : index
    %c0_7 = arith.constant 0 : index
    %7 = vector.load %arg4[%c0_6, %c0_7] : memref<2x128xf32, #tpu.memory_space<vmem>>, vector<2x128xf32>
    tpu.vector_store %arg4[%c0_6, %c0_7], %6 {strides = array<i32>} : memref<2x128xf32, #tpu.memory_space<vmem>>, vector<2x128xf32>,
    return
  }
  func.func @transform_0(%arg0: i32) -> (i32, i32) {
    %c0_i32 = arith.constant 0 : i32
    %c0_i32_0 = arith.constant 0 : i32
    %c0_i32_1 = arith.constant 0 : i32
    return %c0_i32, %c0_i32_0 : i32, i32
  }
  func.func @transform_1(%arg0: i32) -> (i32, i32, i32) {
    %c0_i32 = arith.constant 0 : i32
    %c0_i32_0 = arith.constant 0 : i32
    %c0_i32_1 = arith.constant 0 : i32
    return %arg0, %c0_i32, %c0_i32_0 : i32, i32, i32
  }
  func.func @transform_2(%arg0: i32) -> (i32, i32) {
    %c0_i32 = arith.constant 0 : i32
    %c0_i32_0 = arith.constant 0 : i32
    return %c0_i32, %arg0 : i32, i32
  }
  func.func @transform_3(%arg0: i32) -> (i32, i32) {
    %c0_i32 = arith.constant 0 : i32
    %c0_i32_0 = arith.constant 0 : i32
    return %c0_i32, %arg0 : i32, i32
  }
}

</mosaic_0001>

<bundles_post_ra>
// kernel: simple_model_forward.1
= control target key start
LH: loop header
LB: loop body
LE: loop exit
PB: predicated region body
PF: predicated region fallthrough
CT: control target
= control target key end

     0   :  { %8 = vsyncpa [#allocation3], 0  ;;  %s1637_s0 = inlined_call_operand.vmem [shape: f32[2,1024], index: 0, kind: input, shape index: {}]   ;;  %s1638_s1 = inlined_call_operand.hbm [shape: f32[3,1024,128], index: 1, kind: input, shape index: {}]   ;;  %s1639_s2 = inlined_call_operand.hbm [shape: f32[1,384], index: 2, kind: input, shape index: {}]   ;;  %s1640_s3 = inlined_call_operand.hbm [shape: f32[2,384], index: 3, kind: output, shape index: {}]  }
   0x1   :  { %10 = vsyncpa [#allocation3 + $0x1], 0 }
   0x2   :  { %11 = vsyncpa [#allocation6], 0 }
   0x3   :  { %13 = vsyncpa [#allocation6 + $0x1], 0 }
   0x4   :  { %14 = vsyncpa [#allocation4], 0 }
   0x5   :  { %16 = vsyncpa [#allocation4 + $0x1], 0  ;;  %s1287_s12 = smov 0   ;;  %s1289_s13 = smov 0  }
   0x6   :  { %s1291_s14 = smov 0   ;;  %s1293_s15 = smov 0  }
   0x7 LB: > { %s1308_s16 = sadd.s32 4294967295, %s1259_s15   ;;  %s789_s17 = sadd.s32 4294967294, %s1259_s15   ;;  %s1259_s15 = sphi %s1293_s15, %s1656_s15   ;;  %s1255_s14 = sphi %s1291_s14, %s1655_s14   ;;  %s1251_s13 = sphi %s1289_s13, %s1654_s13   ;;  %s1247_s12 = sphi %s1287_s12, %s1653_s12  }
   0x8   : > { %s1312_s18 = sadd.s32 1, %s1259_s15   ;;  %s50_s19 = sadd.s32 1, %s1255_s14 }
   0x9   : > { %s47_s20 = ssub.s32 %s1259_s15, %s1312_s18  ;;  %p57_p0 = scmp.ne.s32.totalorder %s1255_s14, %s1251_s13 }
   0xa   : > { %p48_p1 = scmp.eq.s32.totalorder %s47_s20, 0  ;;  %p58_p2 = scmp.eq.s32.totalorder %s1259_s15, 0 }
   0xb   : > { %p63_p3 = scmp.ne.s32.totalorder %s1251_s13, %s1247_s12  ;;  %p64_p4 = scmp.eq.s32.totalorder %s1308_s16, 0 }
   0xc   : > { %s1324_s21 = scalar_select %p48_p1, %s1255_s14, %s50_s19  }
   0xd   : > { %p1326_p5 = por %p58_p2, %p57_p0  ;;  %p1330_p6 = por %p64_p4, %p63_p3 }
   0xe   : > { %p113_p7 = scmp.eq.s32.totalorder %s1308_s16, 2  ;;  %p119_p8 = scmp.eq.s32.totalorder %s789_s17, 2 }
   0xf   : > { %s1644_s23 = scalar_select %p1330_p6, 1, 0 }
  0x10   : > { %p1090_p9 = scmp.lt.s32.totalorder %s1259_s15, 3  ;;  %p1336_p10 = por %p113_p7, %p57_p0 }
  0x11   : > { %p1340_p11 = por %p119_p8, %p63_p3  ;;  %s1345_s26 = sand.u32 1, %s1255_s14  }
  0x12   : > { %s1645_s24 = scalar_select %p1336_p10, 1, 0 }
  0x13   : > { %s1646_s25 = scalar_select %p1340_p11, 1, 0 }
  0x14   : > { %s804_s27 = sshll.u32 %s1259_s15, 14  ;;  %s792_s28 = sshll.u32 %s1345_s26, 10 }
  0x15   : > { %s1352_s4 = scalar_lea.hbm %s1638_s1, %s804_s27  ;;  %s146_s5 = scalar_lea.vmem [#allocation2], %s792_s28 }
  0x16   : > { %s153_s6 = sshll.u32 %s146_s5, 4  ;;  %p1356_p12 = pnand %p1090_p9, %p1326_p5  ;;  %s1360_s6 = int_to_ptr.vmem [resolvable:$true] %s153_s6 }
  0x17   : > { %s143_s8 = scalar_lea.sflag [#allocation3], %s1345_s26  ;;  %s1129_s9 = scalar_lea.hbm %s1352_s4, 16384 }
  0x18   : > { %p1130_p13 = scmp.ne.s32.totalorder %s1352_s4, %s1129_s9  ;;  %p1131_p0 = pneg %p1356_p12 }
  0x19   : > { %s1134_s17 = scalar_lea.hbm %s1638_s1, 49152  ;;  %p1135_p3 = scmp.lt.u32.totalorder %s1352_s4, %s1638_s1 }
  0x1a   : > { %p1132_p1 = pnand %p1131_p0, %p1130_p13  ;;  %p1136_p4 = scmp.lt.u32.totalorder %s1134_s17, %s1129_s9 }
  0x1b   : > { %p1138_p7 = scmp.lt.u32.totalorder %s1129_s9, %s1352_s4 }
  0x1c   : > { %p1133_p2 = pneg %p1132_p1  ;;  %p1137_p5 = por %p1136_p4, %p1135_p3 }
  0x1e   : > { %p1139_p8 = por %p1138_p7, %p1137_p5 }
  0x20   : > { %p1140_p9 = pnand %p1139_p8, %p1133_p2 }
  0x22   : > { %1143 = shalt.err (!%p1140_p9)
}
  0x23   : > { %s1144_s22 = scalar_lea.vmem %s1360_s6, 16384  ;;  %s1261_s27 = smov [#allocation2]  }
  0x24   : > { %p1145_p13 = scmp.ne.s32.totalorder %s1360_s6, %s1144_s22  ;;  %s1149_s28 = sshll.u32 %s1261_s27, 4  ;;  %s1150_s28 = int_to_ptr.vmem [resolvable:$false] %s1149_s28 }
  0x25   : > { %s1151_s29 = scalar_lea.vmem %s1150_s28, 32768  ;;  %p1152_p10 = scmp.lt.s32.totalorder %s1360_s6, %s1150_s28 }
  0x26   : > { %p1147_p1 = pnand %p1145_p13, %p1131_p0  ;;  %p1153_p3 = scmp.lt.s32.totalorder %s1151_s29, %s1144_s22 }
  0x28   : > { %p1148_p11 = pneg %p1147_p1  ;;  %p1154_p4 = por %p1153_p3, %p1152_p10 }
  0x2a   : > { %p1155_p5 = pnand %p1154_p4, %p1148_p11 }
  0x2c   : > { %1158 = shalt.err (!%p1155_p5)
}
  0x2d   : > { %s1262_s30 = smov 128   ;;  %s1263_s5 = smov 8  }
  0x2e   : > { %1082 = dma.hbm_to_vmem [thread:$0]  (!%p1356_p12), %s1352_s4, 16384, %s1360_s6, %s143_s8, %s1262_s30, %s1262_s30, %s1263_s5  }
  0x2f   : > { %p796_p2 = scmp.ge.s32.totalorder %s1259_s15, 1  ;;  %p178_p7 = scmp.lt.s32.totalorder %s1259_s15, 4 }
  0x30   : > { %s795_s10 = sshll.u32 %s1259_s15, 4  ;;  %s166_s20 = scalar_lea.vmem [#allocation5], %s1345_s26 }
  0x31   : > { %p1392_p10 = pnand %p796_p2, %p178_p7  ;;  %s1400_s19 = scalar_lea.hbm %s1639_s2, %s795_s10 }
  0x32   : > { %s173_s22 = sshll.u32 %s166_s20, 4  ;;  %s164_s4 = scalar_lea.sflag [#allocation6], %s1345_s26  ;;  %s174_s22 = int_to_ptr.vmem [resolvable:$true] %s173_s22 }
  0x33   : > { %s1648_s9 = scalar_select %p1392_p10, 1, 0 }
  0x34   : > { %s1159_s6 = scalar_lea.hbm %s1400_s19, 16  ;;  %s1164_s28 = scalar_lea.hbm %s1639_s2, 48 }
  0x35   : > { %p1160_p11 = scmp.ne.s32.totalorder %s1400_s19, %s1159_s6  ;;  %p1165_p13 = scmp.lt.u32.totalorder %s1400_s19, %s1639_s2 }
  0x36   : > { %p1166_p1 = scmp.lt.u32.totalorder %s1164_s28, %s1159_s6  ;;  %p1168_p4 = scmp.lt.u32.totalorder %s1159_s6, %s1400_s19 }
  0x37   : > { %p1162_p8 = pnand %p1160_p11, %p1131_p0 }
  0x38   : > { %p1167_p3 = por %p1166_p1, %p1165_p13 }
  0x39   : > { %p1163_p9 = pneg %p1162_p8 }
  0x3a   : > { %p1169_p5 = por %p1168_p4, %p1167_p3 }
  0x3c   : > { %p1170_p2 = pnand %p1169_p5, %p1163_p9 }
  0x3e   : > { %1173 = shalt.err (!%p1170_p2)
}
  0x3f   : > { %s1174_s26 = scalar_lea.vmem %s174_s22, 16  ;;  %s1264_s5 = smov [#allocation5]  }
  0x40   : > { %p1175_p7 = scmp.ne.s32.totalorder %s174_s22, %s1174_s26  ;;  %s1179_s10 = sshll.u32 %s1264_s5, 4  ;;  %s1180_s10 = int_to_ptr.vmem [resolvable:$false] %s1179_s10 }
  0x41   : > { %s1181_s11 = scalar_lea.vmem %s1180_s10, 32  ;;  %p1182_p6 = scmp.lt.s32.totalorder %s174_s22, %s1180_s10 }
  0x42   : > { %p1177_p11 = pnand %p1175_p7, %p1131_p0  ;;  %p1183_p10 = scmp.lt.s32.totalorder %s1181_s11, %s1174_s26 }
  0x44   : > { %p1178_p8 = pneg %p1177_p11  ;;  %p1184_p1 = por %p1183_p10, %p1182_p6 }
  0x46   : > { %p1185_p13 = pnand %p1184_p1, %p1178_p8 }
  0x48   : > { %1188 = shalt.err (!%p1185_p13)
}
  0x49   : > { %1085 = dma.hbm_to_vmem [thread:$0]  (!%p1356_p12), %s1400_s19, 16, %s174_s22, %s164_s4  }
  0x4a   : > { %p1649_p9 = scmp.ne.s32.totalorder %s1648_s9, 0 }
  0x4b   : > { %s1426_s17 = sand.u32 (!%p1649_p9), 1, %s1251_s13   ;;  %p1650_p6 = scmp.ne.s32.totalorder (!%p1649_p9), %s1644_s23, 0 }
  0x4c   : > { %182 = sbr.rel (%p1649_p9) target bundleno = 386 (0x182), region = 32  ;;  %s797_s20 = sshll.u32 (!%p1649_p9), %s1426_s17, 10 }
  0x4d   : > { %s185_s6 = scalar_lea.sflag (!%p1649_p9), [#allocation3], %s1426_s17  ;;  %s1430_s8 = scalar_lea.vmem (!%p1649_p9), [#allocation2], %s797_s20 }
  0x53   : > { %1234 = dma.done.wait (%p1650_p6), %s185_s6, 16384  }
  0x54   : > { %1236 = vsyncadd (%p1650_p6), %s185_s6, 4294950912  ;;  %s194_s7 = scalar_lea.sflag [#allocation6], %s1426_s17  ;;  %s196_s9 = scalar_lea.vmem [#allocation5], %s1426_s17 }
  0x55   : > { %1238 = dma.done.wait (%p1650_p6), %s194_s7, 16  }
  0x56   : > { %1240 = vsyncadd (%p1650_p6), %s194_s7, 4294967280  ;;  %v241_v0 = vld [vmem:[%s1430_s8 + $0x80] sm:$0xff]  ;;  %v242_v1 = vld [vmem:[%s1430_s8 + $0x88] sm:$0xff]  ;;  %v1265_v47 = vmov 1983009808   ;;  %v366_v49 = vlaneseq  ;;  %s798_s27 = sshll.u32 %s1426_s17, 1 }
  0x57   : > { %v225_v2 = vld [vmem:[%s1430_s8] sm:$0xff]  ;;  %v945_v3 = vpack.c.bf16 %v242_v1, %v241_v0  ;;  %v226_v4 = vld [vmem:[%s1430_s8 + $0x8] sm:$0xff]  ;;  %v243_v11 = vld [vmem:[%s1430_s8 + $0x90] sm:$0xff]  ;;  %v364_v48 = vunpack.c.l.s4 %v1265_v47  ;;  %s801_s28 = sshll.u32 %s1308_s16, 5  ;;  %s222_s29 = scalar_lea.vmem [#allocation7], %s798_s27 }
  0x58   : > { %v273_v5 = vld [vmem:[%s1430_s8 + $0x180] sm:$0xff]  ;;  %v274_v6 = vld [vmem:[%s1430_s8 + $0x188] sm:$0xff]  ;;  %v947_v7 = vpack.c.bf16 %v226_v4, %v225_v2  ;;  %v244_v13 = vld [vmem:[%s1430_s8 + $0x98] sm:$0xff]  ;;  %v367_v0 = vshrl.u32 %v366_v49, 7  ;;  %s699_s30 = sshll.u32 %s222_s29, 4  ;;  %s1594_s10 = scalar_lea.hbm %s1640_s3, %s801_s28  ;;  %s1596_s30 = int_to_ptr.vmem [resolvable:$true] %s699_s30 }
  0x59   : > { %v977_v8 = vpack.c.bf16 %v274_v6, %v273_v5  ;;  %v257_v9 = vld [vmem:[%s1430_s8 + $0x100] sm:$0xff]  ;;  %v258_v10 = vld [vmem:[%s1430_s8 + $0x108] sm:$0xff]  ;;  %946 = vmatprep.subr.bf16.mxu0 %v945_v3  ;;  %v227_v14 = vld [vmem:[%s1430_s8 + $0x10] sm:$0xff]  ;;  %v949_v16 = vpack.c.bf16 %v244_v13, %v243_v11  ;;  %v365_v63 = vunpack.c.0.s8 %v364_v48  ;;  %s686_s11 = scalar_lea.sflag [#allocation4], %s1426_s17  ;;  %s1189_s20 = scalar_lea.vmem %s1596_s30, 32 }
  0x5a   : > { %v979_v12 = vpack.c.bf16 %v258_v10, %v257_v9  ;;  %v228_v15 = vld [vmem:[%s1430_s8 + $0x18] sm:$0xff]  ;;  %948 = vmatpush3.bf16.msra.mxu0 %v947_v7  ;;  %v275_v18 = vld [vmem:[%s1430_s8 + $0x190] sm:$0xff]  ;;  %v245_v23 = vld [vmem:[%s1430_s8 + $0xa0] sm:$0xff]  ;;  %p1190_p12 = scmp.ne.s32.totalorder %s1596_s30, %s1189_s20  ;;  %p1651_p0 = scmp.ne.s32.totalorder %s1645_s24, 0 }
  0x5b   : > { %978 = vmatprep.subr.bf16.mxu1 %v977_v8  ;;  %v951_v17 = vpack.c.bf16 %v228_v15, %v227_v14  ;;  %v276_v19 = vld [vmem:[%s1430_s8 + $0x198] sm:$0xff]  ;;  %v259_v20 = vld [vmem:[%s1430_s8 + $0x110] sm:$0xff]  ;;  %v246_v24 = vld [vmem:[%s1430_s8 + $0xa8] sm:$0xff]  ;;  %950 = vmatprep.subr.bf16.mxu0 %v949_v16  ;;  %v1492_v13 = vsub.s32 %v365_v63, %v367_v0  ;;  %s1266_s16 = smov [#allocation7]  }
  0x5c   : > { %980 = vmatpush3.bf16.msra.mxu1 %v979_v12  ;;  %v981_v21 = vpack.c.bf16 %v276_v19, %v275_v18  ;;  %v260_v22 = vld [vmem:[%s1430_s8 + $0x118] sm:$0xff]  ;;  %v953_v26 = vpack.c.bf16 %v246_v24, %v245_v23  ;;  %v229_v27 = vld [vmem:[%s1430_s8 + $0x20] sm:$0xff]  ;;  %v230_v28 = vld [vmem:[%s1430_s8 + $0x28] sm:$0xff]  ;;  %p1191_p10 = pnand %p1190_p12, %p1651_p0  ;;  %s1193_s6 = sshll.u32 %s1266_s16, 4  ;;  %s1194_s6 = int_to_ptr.vmem [resolvable:$false] %s1193_s6 }
  0x5d   : > { %v983_v25 = vpack.c.bf16 %v260_v22, %v259_v20  ;;  %v277_v29 = vld [vmem:[%s1430_s8 + $0x1a0] sm:$0xff]  ;;  %v278_v30 = vld [vmem:[%s1430_s8 + $0x1a8] sm:$0xff]  ;;  %v955_v33 = vpack.c.bf16 %v230_v28, %v229_v27  ;;  %v247_v35 = vld [vmem:[%s1430_s8 + $0xb0] sm:$0xff]  ;;  %p1196_p4 = scmp.lt.s32.totalorder %s1596_s30, %s1194_s6 }
  0x5e   : > { %982 = vmatprep.subr.bf16.mxu1 %v981_v21  ;;  %v261_v31 = vld [vmem:[%s1430_s8 + $0x120] sm:$0xff]  ;;  %v262_v32 = vld [vmem:[%s1430_s8 + $0x128] sm:$0xff]  ;;  %952 = vmatpush3.bf16.msra.mxu0 %v951_v17  ;;  %v985_v34 = vpack.c.bf16 %v278_v30, %v277_v29  ;;  %v248_v36 = vld [vmem:[%s1430_s8 + $0xb8] sm:$0xff]  ;;  %p1192_p3 = pneg %p1191_p10 }
  0x5f   : > { %v231_v37 = vld [vmem:[%s1430_s8 + $0x30] sm:$0xff]  ;;  %954 = vmatprep.subr.bf16.mxu0 %v953_v26  ;;  %v987_v38 = vpack.c.bf16 %v262_v32, %v261_v31  ;;  %v957_v39 = vpack.c.bf16 %v248_v36, %v247_v35  ;;  %v232_v40 = vld [vmem:[%s1430_s8 + $0x38] sm:$0xff]  ;;  %v249_v46 = vld [vmem:[%s1430_s8 + $0xc0] sm:$0xff] }
  0x60   : > { %984 = vmatpush3.bf16.msra.mxu1 %v983_v25  ;;  %v279_v41 = vld [vmem:[%s1430_s8 + $0x1b0] sm:$0xff]  ;;  %v280_v42 = vld [vmem:[%s1430_s8 + $0x1b8] sm:$0xff]  ;;  %v250_v50 = vld [vmem:[%s1430_s8 + $0xc8] sm:$0xff]  ;;  %v959_v51 = vpack.c.bf16 %v232_v40, %v231_v37 }
  0x61   : > { %986 = vmatprep.subr.bf16.mxu1 %v985_v34  ;;  %v989_v43 = vpack.c.bf16 %v280_v42, %v279_v41  ;;  %v263_v44 = vld [vmem:[%s1430_s8 + $0x130] sm:$0xff]  ;;  %v264_v45 = vld [vmem:[%s1430_s8 + $0x138] sm:$0xff]  ;;  %v281_v52 = vld [vmem:[%s1430_s8 + $0x1c0] sm:$0xff]  ;;  %v961_v55 = vpack.c.bf16 %v250_v50, %v249_v46 }
  0x62   : > { %956 = vmatpush3.bf16.msra.mxu0 %v955_v33  ;;  %v282_v53 = vld [vmem:[%s1430_s8 + $0x1c8] sm:$0xff]  ;;  %v991_v54 = vpack.c.bf16 %v264_v45, %v263_v44  ;;  %v233_v56 = vld [vmem:[%s1430_s8 + $0x40] sm:$0xff]  ;;  %v251_v61 = vld [vmem:[%s1430_s8 + $0xd0] sm:$0xff] }
  0x63   : > { %958 = vmatprep.subr.bf16.mxu0 %v957_v39  ;;  %v234_v57 = vld [vmem:[%s1430_s8 + $0x48] sm:$0xff]  ;;  %v265_v58 = vld [vmem:[%s1430_s8 + $0x140] sm:$0xff]  ;;  %v993_v59 = vpack.c.bf16 %v282_v53, %v281_v52  ;;  %v252_v62 = vld [vmem:[%s1430_s8 + $0xd8] sm:$0xff] }
  0x64   : > { %988 = vmatpush3.bf16.msra.mxu1 %v987_v38  ;;  %v266_v60 = vld [vmem:[%s1430_s8 + $0x148] sm:$0xff]  ;;  %v283_v1 = vld [vmem:[%s1430_s8 + $0x1d0] sm:$0xff]  ;;  %v284_v2 = vld [vmem:[%s1430_s8 + $0x1d8] sm:$0xff]  ;;  %v963_v3 = vpack.c.bf16 %v234_v57, %v233_v56  ;;  %v965_v5 = vpack.c.bf16 %v252_v62, %v251_v61 }
  0x65   : > { %990 = vmatprep.subr.bf16.mxu1 %v989_v43  ;;  %v995_v4 = vpack.c.bf16 %v266_v60, %v265_v58  ;;  %v235_v6 = vld [vmem:[%s1430_s8 + $0x50] sm:$0xff]  ;;  %v236_v7 = vld [vmem:[%s1430_s8 + $0x58] sm:$0xff]  ;;  %v997_v9 = vpack.c.bf16 %v284_v2, %v283_v1  ;;  %v253_v11 = vld [vmem:[%s1430_s8 + $0xe0] sm:$0xff] }
  0x66   : > { %960 = vmatpush3.bf16.msra.mxu0 %v959_v51  ;;  %v267_v8 = vld [vmem:[%s1430_s8 + $0x150] sm:$0xff]  ;;  %v268_v10 = vld [vmem:[%s1430_s8 + $0x158] sm:$0xff]  ;;  %v254_v12 = vld [vmem:[%s1430_s8 + $0xe8] sm:$0xff]  ;;  %v967_v16 = vpack.c.bf16 %v236_v7, %v235_v6 }
  0x67   : > { %962 = vmatprep.subr.bf16.mxu0 %v961_v55  ;;  %v285_v14 = vld [vmem:[%s1430_s8 + $0x1e0] sm:$0xff]  ;;  %v286_v15 = vld [vmem:[%s1430_s8 + $0x1e8] sm:$0xff]  ;;  %v999_v18 = vpack.c.bf16 %v268_v10, %v267_v8  ;;  %v969_v19 = vpack.c.bf16 %v254_v12, %v253_v11  ;;  %v255_v25 = vld [vmem:[%s1430_s8 + $0xf0] sm:$0xff] }
  0x68   : > { %992 = vmatpush3.bf16.msra.mxu1 %v991_v54  ;;  %v237_v17 = vld [vmem:[%s1430_s8 + $0x60] sm:$0xff]  ;;  %v238_v20 = vld [vmem:[%s1430_s8 + $0x68] sm:$0xff]  ;;  %v1001_v23 = vpack.c.bf16 %v286_v15, %v285_v14  ;;  %v256_v26 = vld [vmem:[%s1430_s8 + $0xf8] sm:$0xff] }
  0x69   : > { %994 = vmatprep.subr.bf16.mxu1 %v993_v59  ;;  %v269_v21 = vld [vmem:[%s1430_s8 + $0x160] sm:$0xff]  ;;  %v270_v24 = vld [vmem:[%s1430_s8 + $0x168] sm:$0xff]  ;;  %v287_v29 = vld [vmem:[%s1430_s8 + $0x1f0] sm:$0xff]  ;;  %v971_v31 = vpack.c.bf16 %v238_v20, %v237_v17  ;;  %v973_v35 = vpack.c.bf16 %v256_v26, %v255_v25 }
  0x6a   : > { %964 = vmatpush3.bf16.msra.mxu0 %v963_v3  ;;  %v223_v22 = vld [vmem:[%s1637_s0] sm:$0xff]  ;;  %v288_v30 = vld [vmem:[%s1430_s8 + $0x1f8] sm:$0xff]  ;;  %v1003_v34 = vpack.c.bf16 %v270_v24, %v269_v21  ;;  %v239_v36 = vld [vmem:[%s1430_s8 + $0x70] sm:$0xff] }
  0x6b   : > { %966 = vmatprep.subr.bf16.mxu0 %v965_v5  ;;  %v369_v27 = vrot.slane %v223_v22, %v1492_v13  ;;  %v362_v28 = vcombine.high %v223_v22, %v223_v22  ;;  %v240_v37 = vld [vmem:[%s1430_s8 + $0x78] sm:$0xff]  ;;  %v271_v38 = vld [vmem:[%s1430_s8 + $0x170] sm:$0xff]  ;;  %v1005_v39 = vpack.c.bf16 %v288_v30, %v287_v29  ;;  %v305_v41 = vld [vmem:[%s1430_s8 + $0x280] sm:$0xff] }
  0x6c   : > { %996 = vmatpush3.bf16.msra.mxu1 %v995_v4  ;;  %v272_v40 = vld [vmem:[%s1430_s8 + $0x178] sm:$0xff]  ;;  %v306_v42 = vld [vmem:[%s1430_s8 + $0x288] sm:$0xff]  ;;  %v337_v44 = vld [vmem:[%s1430_s8 + $0x380] sm:$0xff]  ;;  %v975_v46 = vpack.c.bf16 %v240_v37, %v239_v36 }
  0x6d   : > { %998 = vmatprep.subr.bf16.mxu1 %v997_v9  ;;  %v377_v32 = vcombine.high %v369_v27, %v369_v27  ;;  %v376_v33 = vrot.slane %v362_v28, %v1492_v13  ;;  %v338_v45 = vld [vmem:[%s1430_s8 + $0x388] sm:$0xff]  ;;  %v1007_v47 = vpack.c.bf16 %v272_v40, %v271_v38  ;;  %v1009_v48 = vpack.c.bf16 %v306_v42, %v305_v41  ;;  %v289_v49 = vld [vmem:[%s1430_s8 + $0x200] sm:$0xff]  ;;  %v307_v54 = vld [vmem:[%s1430_s8 + $0x290] sm:$0xff] }
  0x6e   : > { %968 = vmatpush3.bf16.msra.mxu0 %v967_v16  ;;  %v290_v50 = vld [vmem:[%s1430_s8 + $0x208] sm:$0xff]  ;;  %v321_v51 = vld [vmem:[%s1430_s8 + $0x300] sm:$0xff]  ;;  %v1041_v52 = vpack.c.bf16 %v338_v45, %v337_v44  ;;  %v308_v55 = vld [vmem:[%s1430_s8 + $0x298] sm:$0xff] }
  0x6f   : > { %970 = vmatprep.subr.bf16.mxu0 %v969_v19  ;;  %468 = vmatprep.mubr.f32.mxu0 %v377_v32  ;;  %v378_v43 = vcombine.high %v376_v33, %v376_v33  ;;  %v322_v53 = vld [vmem:[%s1430_s8 + $0x308] sm:$0xff]  ;;  %v339_v56 = vld [vmem:[%s1430_s8 + $0x390] sm:$0xff]  ;;  %v340_v57 = vld [vmem:[%s1430_s8 + $0x398] sm:$0xff]  ;;  %v1011_v58 = vpack.c.bf16 %v290_v50, %v289_v49  ;;  %v1013_v60 = vpack.c.bf16 %v308_v55, %v307_v54 }
  0x70   : > { %1000 = vmatpush3.bf16.msra.mxu1 %v999_v18  ;;  %v1043_v59 = vpack.c.bf16 %v322_v53, %v321_v51  ;;  %v291_v61 = vld [vmem:[%s1430_s8 + $0x210] sm:$0xff]  ;;  %v292_v62 = vld [vmem:[%s1430_s8 + $0x218] sm:$0xff]  ;;  %v1045_v0 = vpack.c.bf16 %v340_v57, %v339_v56  ;;  %v309_v2 = vld [vmem:[%s1430_s8 + $0x2a0] sm:$0xff] }
  0x71   : > { %1002 = vmatprep.subr.bf16.mxu1 %v1001_v23  ;;  %538 = vmatprep.mubr.f32.mxu1 %v378_v43  ;;  %v323_v63 = vld [vmem:[%s1430_s8 + $0x310] sm:$0xff]  ;;  %v324_v1 = vld [vmem:[%s1430_s8 + $0x318] sm:$0xff]  ;;  %v310_v3 = vld [vmem:[%s1430_s8 + $0x2a8] sm:$0xff]  ;;  %v1015_v6 = vpack.c.bf16 %v292_v62, %v291_v61 }
  0x72   : > { %972 = vmatpush3.bf16.msra.mxu0 %v971_v31  ;;  %v341_v4 = vld [vmem:[%s1430_s8 + $0x3a0] sm:$0xff]  ;;  %v342_v5 = vld [vmem:[%s1430_s8 + $0x3a8] sm:$0xff]  ;;  %v1047_v7 = vpack.c.bf16 %v324_v1, %v323_v63  ;;  %v1017_v8 = vpack.c.bf16 %v310_v3, %v309_v2  ;;  %v311_v15 = vld [vmem:[%s1430_s8 + $0x2b0] sm:$0xff] }
  0x73   : > { %974 = vmatprep.subr.bf16.mxu0 %v973_v35  ;;  %v293_v9 = vld [vmem:[%s1430_s8 + $0x220] sm:$0xff]  ;;  %v294_v10 = vld [vmem:[%s1430_s8 + $0x228] sm:$0xff]  ;;  %v1049_v12 = vpack.c.bf16 %v342_v5, %v341_v4  ;;  %v312_v16 = vld [vmem:[%s1430_s8 + $0x2b8] sm:$0xff] }
  0x74   : > { %1004 = vmatpush3.bf16.msra.mxu1 %v1003_v34  ;;  %v325_v11 = vld [vmem:[%s1430_s8 + $0x320] sm:$0xff]  ;;  %v326_v14 = vld [vmem:[%s1430_s8 + $0x328] sm:$0xff]  ;;  %v343_v17 = vld [vmem:[%s1430_s8 + $0x3b0] sm:$0xff]  ;;  %v1019_v19 = vpack.c.bf16 %v294_v10, %v293_v9  ;;  %v1021_v21 = vpack.c.bf16 %v312_v16, %v311_v15 }
  0x75   : > { %1006 = vmatprep.subr.bf16.mxu1 %v1005_v39  ;;  %v344_v18 = vld [vmem:[%s1430_s8 + $0x3b8] sm:$0xff]  ;;  %v1051_v20 = vpack.c.bf16 %v326_v14, %v325_v11  ;;  %v295_v22 = vld [vmem:[%s1430_s8 + $0x230] sm:$0xff]  ;;  %v314_v28 = vld [vmem:[%s1430_s8 + $0x2c8] sm:$0xff] }
  0x76   : > { %976 = vmatpush3.bf16.msra.mxu0 %v975_v46  ;;  %v296_v23 = vld [vmem:[%s1430_s8 + $0x238] sm:$0xff]  ;;  %v327_v24 = vld [vmem:[%s1430_s8 + $0x330] sm:$0xff]  ;;  %v1053_v25 = vpack.c.bf16 %v344_v18, %v343_v17  ;;  %v345_v29 = vld [vmem:[%s1430_s8 + $0x3c0] sm:$0xff] }
  0x77   : > { %1010 = vmatprep.subr.bf16.mxu0 %v1009_v48  ;;  %v328_v26 = vld [vmem:[%s1430_s8 + $0x338] sm:$0xff]  ;;  %v346_v30 = vld [vmem:[%s1430_s8 + $0x3c8] sm:$0xff]  ;;  %v1023_v32 = vpack.c.bf16 %v296_v23, %v295_v22  ;;  %v297_v37 = vld [vmem:[%s1430_s8 + $0x240] sm:$0xff] }
  0x78   : > { %1008 = vmatpush3.bf16.msra.mxu1 %v1007_v47  ;;  %v224_v31 = vld [vmem:[%s1637_s0 + $0x8] sm:$0xff]  ;;  %v1055_v35 = vpack.c.bf16 %v328_v26, %v327_v24  ;;  %v329_v39 = vld [vmem:[%s1430_s8 + $0x340] sm:$0xff]  ;;  %v1057_v40 = vpack.c.bf16 %v346_v30, %v345_v29  ;;  %v315_v42 = vld [vmem:[%s1430_s8 + $0x2d0] sm:$0xff] }
  0x79   : > { %1042 = vmatprep.subr.bf16.mxu1 %v1041_v52  ;;  %469 = vmatmul.mubr.f32.vlgmr.msra.gmra.mrb[0].mxu0 %v369_v27  ;;  %v313_v27 = vld [vmem:[%s1430_s8 + $0x2c0] sm:$0xff]  ;;  %v379_v34 = vcombine.high %v224_v31, %v224_v31  ;;  %v298_v38 = vld [vmem:[%s1430_s8 + $0x248] sm:$0xff]  ;;  %v316_v43 = vld [vmem:[%s1430_s8 + $0x2d8] sm:$0xff] }
  0x7a   : > { %1012 = vmatpush3.bf16.msra.mxu0 %v1011_v58  ;;  %v1025_v36 = vpack.c.bf16 %v314_v28, %v313_v27  ;;  %v330_v41 = vld [vmem:[%s1430_s8 + $0x348] sm:$0xff]  ;;  %v347_v46 = vld [vmem:[%s1430_s8 + $0x3d0] sm:$0xff]  ;;  %v348_v47 = vld [vmem:[%s1430_s8 + $0x3d8] sm:$0xff]  ;;  %v1027_v48 = vpack.c.bf16 %v298_v38, %v297_v37  ;;  %v1029_v51 = vpack.c.bf16 %v316_v43, %v315_v42 }
  0x7b   : > { %539 = vmatmul.mubr.f32.vlgmr.msra.gmra.mrb[0].mxu1 %v376_v33  ;;  %1014 = vmatprep.subr.bf16.mxu0 %v1013_v60  ;;  %v1553_v33 = vrot.slane %v224_v31, %v1492_v13  ;;  %v393_v45 = vrot.slane %v379_v34, %v1492_v13  ;;  %v1059_v50 = vpack.c.bf16 %v330_v41, %v329_v39  ;;  %v299_v52 = vld [vmem:[%s1430_s8 + $0x250] sm:$0xff]  ;;  %v300_v53 = vld [vmem:[%s1430_s8 + $0x258] sm:$0xff]  ;;  %v317_v56 = vld [vmem:[%s1430_s8 + $0x2e0] sm:$0xff] }
  0x7c   : > { %1044 = vmatpush3.bf16.msra.mxu1 %v1043_v59  ;;  %v331_v54 = vld [vmem:[%s1430_s8 + $0x350] sm:$0xff]  ;;  %v1061_v13 = vpack.c.bf16 %v348_v47, %v347_v46  ;;  %v332_v55 = vld [vmem:[%s1430_s8 + $0x358] sm:$0xff]  ;;  %v318_v57 = vld [vmem:[%s1430_s8 + $0x2e8] sm:$0xff]  ;;  %v1031_v60 = vpack.c.bf16 %v300_v53, %v299_v52 }
  0x7d   : > { %1046 = vmatprep.subr.bf16.mxu1 %v1045_v0  ;;  %v394_v44 = vcombine.high %v1553_v33, %v1553_v33  ;;  %v395_v49 = vcombine.high %v393_v45, %v393_v45  ;;  %v349_v58 = vld [vmem:[%s1430_s8 + $0x3e0] sm:$0xff]  ;;  %v350_v59 = vld [vmem:[%s1430_s8 + $0x3e8] sm:$0xff]  ;;  %v1063_v61 = vpack.c.bf16 %v332_v55, %v331_v54  ;;  %v1033_v62 = vpack.c.bf16 %v318_v57, %v317_v56  ;;  %v319_v4 = vld [vmem:[%s1430_s8 + $0x2f0] sm:$0xff] }
  0x7e   : > { %1016 = vmatpush3.bf16.msra.mxu0 %v1015_v6  ;;  %v301_v63 = vld [vmem:[%s1430_s8 + $0x260] sm:$0xff]  ;;  %v302_v0 = vld [vmem:[%s1430_s8 + $0x268] sm:$0xff]  ;;  %v1065_v2 = vpack.c.bf16 %v350_v59, %v349_v58  ;;  %v320_v5 = vld [vmem:[%s1430_s8 + $0x2f8] sm:$0xff] }
  0x7f   : > { %1018 = vmatprep.subr.bf16.mxu0 %v1017_v8  ;;  %608 = vmatprep.mubr.f32.mxu0 %v394_v44  ;;  %v333_v1 = vld [vmem:[%s1430_s8 + $0x360] sm:$0xff]  ;;  %v334_v3 = vld [vmem:[%s1430_s8 + $0x368] sm:$0xff]  ;;  %v351_v6 = vld [vmem:[%s1430_s8 + $0x3f0] sm:$0xff]  ;;  %v1035_v8 = vpack.c.bf16 %v302_v0, %v301_v63  ;;  %v1037_v10 = vpack.c.bf16 %v320_v5, %v319_v4 }
  0x80   : > { %1048 = vmatpush3.bf16.msra.mxu1 %v1047_v7  ;;  %678 = vmatprep.mubr.f32.mxu1 %v395_v49  ;;  %v352_v7 = vld [vmem:[%s1430_s8 + $0x3f8] sm:$0xff]  ;;  %v1067_v9 = vpack.c.bf16 %v334_v3, %v333_v1  ;;  %v303_v11 = vld [vmem:[%s1430_s8 + $0x270] sm:$0xff] }
  0x81   : > { %1050 = vmatprep.subr.bf16.mxu1 %v1049_v12  ;;  %v304_v12 = vld [vmem:[%s1430_s8 + $0x278] sm:$0xff]  ;;  %v1069_v14 = vpack.c.bf16 %v352_v7, %v351_v6  ;;  %v335_v15 = vld [vmem:[%s1430_s8 + $0x370] sm:$0xff] }
  0x82   : > { %1020 = vmatpush3.bf16.msra.mxu0 %v1019_v19  ;;  %v336_v16 = vld [vmem:[%s1430_s8 + $0x378] sm:$0xff]  ;;  %v1039_v17 = vpack.c.bf16 %v304_v12, %v303_v11  ;;  %s1195_s8 = scalar_lea.vmem %s1194_s6, 64 }
  0x83   : > { %1022 = vmatprep.subr.bf16.mxu0 %v1021_v21  ;;  %v1071_v18 = vpack.c.bf16 %v336_v16, %v335_v15  ;;  %p1197_p5 = scmp.lt.s32.totalorder %s1195_s8, %s1189_s20 }
  0x84   : > { %1052 = vmatpush3.bf16.msra.mxu1 %v1051_v20  ;;  %v799_v20 = vld [vmem:[%s196_s9] ss:$0 sm:$0xff] }
  0x85   : > { %1054 = vmatprep.subr.bf16.mxu1 %v1053_v25  ;;  %p1198_p2 = por %p1197_p5, %p1196_p4 }
  0x86   : > { %1024 = vmatpush3.bf16.msra.mxu0 %v1023_v32 }
  0x87   : > { %1026 = vmatprep.subr.bf16.mxu0 %v1025_v36  ;;  %p1199_p7 = pnand %p1198_p2, %p1192_p3 }
  0x88   : > { %1056 = vmatpush3.bf16.msra.mxu1 %v1055_v35 }
  0x89   : > { %1058 = vmatprep.subr.bf16.mxu1 %v1057_v40 }
  0x8a   : > { %1028 = vmatpush3.bf16.msra.mxu0 %v1027_v48 }
  0x8b   : > { %1030 = vmatprep.subr.bf16.mxu0 %v1029_v51 }
  0x8c   : > { %1060 = vmatpush3.bf16.msra.mxu1 %v1059_v50 }
  0x8d   : > { %1062 = vmatprep.subr.bf16.mxu1 %v1061_v13 }
  0x8e   : > { %1032 = vmatpush3.bf16.msra.mxu0 %v1031_v60 }
  0x8f   : > { %1034 = vmatprep.subr.bf16.mxu0 %v1033_v62 }
  0x90   : > { %1064 = vmatpush3.bf16.msra.mxu1 %v1063_v61 }
  0x91   : > { %1066 = vmatprep.subr.bf16.mxu1 %v1065_v2 }
  0x92   : > { %1036 = vmatpush3.bf16.msra.mxu0 %v1035_v8 }
  0x93   : > { %1038 = vmatprep.subr.bf16.mxu0 %v1037_v10 }
  0x94   : > { %1068 = vmatpush3.bf16.msra.mxu1 %v1067_v9 }
  0x95   : > { %1070 = vmatprep.subr.bf16.mxu1 %v1069_v14 }
  0x96   : > { %1040 = vmatpush3.bf16.msra.mxu0 %v1039_v17 }
  0x98   : > { %1072 = vmatpush3.bf16.msra.mxu1 %v1071_v18 }
  0x99   : > { %609 = vmatmul.mubr.f32.vlgmr.msra.gmra.mrb[2].mxu0 %v1553_v33 }
  0x9b   : > { %679 = vmatmul.mubr.f32.vlgmr.msra.gmra.mrb[2].mxu1 %v393_v45 }
 0x14c   : > { %v837_v19 = vpop.f32.mrb[0].mxu0 }
 0x14d   : > { %v838_v21 = vpop.f32.mrb[1].mxu0 }
 0x14e   : > { %v872_v22 = vpop.f32.mrb[0].mxu1  ;;  %v839_v23 = vadd.f32 %v838_v21, %v837_v19 }
 0x14f   : > { %v873_v24 = vpop.f32.mrb[1].mxu1 }
 0x150   : > { %v874_v25 = vadd.f32 %v873_v24, %v872_v22  ;;  %v471_v26 = vadd.f32 %v839_v23, %v799_v20 }
 0x152   : > { %v541_v27 = vadd.f32 %v874_v25, %v471_v26 }
 0x16c   : > { %v907_v28 = vpop.f32.mrb[2].mxu0 }
 0x16d   : > { %v908_v29 = vpop.f32.mrb[3].mxu0 }
 0x16e   : > { %v942_v30 = vpop.f32.mrb[2].mxu1  ;;  %v909_v31 = vadd.f32 %v908_v29, %v907_v28 }
 0x16f   : > { %v943_v32 = vpop.f32.mrb[3].mxu1 }
 0x170   : > { %v944_v33 = vadd.f32 %v943_v32, %v942_v30  ;;  %v611_v34 = vadd.f32 %v909_v31, %v541_v27 }
 0x172   : > { %v681_v35 = vadd.f32 %v944_v33, %v611_v34 }
 0x174   : > { %684 = vst [vmem:[%s222_s29] sm:$0x3] %v681_v35 }
 0x175   : > { %1202 = shalt.err (!%p1199_p7)
}
 0x176   : > { %s1203_s17 = scalar_lea.hbm %s1594_s10, 32  ;;  %s1207_s23 = scalar_lea.hbm %s1640_s3, 96 }
 0x177   : > { %p1204_p11 = scmp.ne.s32.totalorder %s1594_s10, %s1203_s17  ;;  %p1208_p13 = scmp.lt.u32.totalorder %s1594_s10, %s1640_s3 }
 0x178   : > { %p1209_p9 = scmp.lt.u32.totalorder %s1207_s23, %s1203_s17  ;;  %p1211_p12 = scmp.lt.u32.totalorder %s1203_s17, %s1594_s10 }
 0x179   : > { %p1205_p8 = pnand %p1204_p11, %p1651_p0 }
 0x17a   : > { %p1210_p6 = por %p1209_p9, %p1208_p13 }
 0x17b   : > { %p1206_p1 = pneg %p1205_p8 }
 0x17c   : > { %p1212_p10 = por %p1211_p12, %p1210_p6 }
 0x17e   : > { %p1213_p3 = pnand %p1212_p10, %p1206_p1 }
 0x180   : > { %1216 = shalt.err (!%p1213_p3)
}
 0x181   : > { %1077 = dma.vmem_to_hbm [thread:$0]  (%p1651_p0), %s1596_s30, 32, %s1594_s10, %s686_s11  }
 0x182 PF: > { %p1091_p4 = scmp.ge.s32.totalorder %s1259_s15, 2  ;;  %s711_s4 = sand.u32 1, %s1247_s12  }
 0x183   : > { %p1652_p5 = scmp.ne.s32.totalorder %s1646_s25, 0  ;;  %s712_s27 = scalar_lea.sflag [#allocation4], %s711_s4 }
 0x185   : > { %p1087_p2 = pnand %p1091_p4, %p1652_p5 }
 0x187   : > { %1242 = dma.done.wait (!%p1087_p2), %s712_s27, 32  }
 0x188   : > { %1244 = vsyncadd (!%p1087_p2), %s712_s27, 4294967264  ;;  %p19_p7 = scmp.ge.s32.totalorder %s1312_s18, 5   ;;  %s1653_s12 = smov %s1251_s13 }
 0x189   : > { %s1654_s13 = smov %s1255_s14  ;;  %s1655_s14 = smov %s1324_s21 }
 0x18a   : > { %s1656_s15 = smov %s1312_s18  ;;  %21 = sbr.rel (!%p19_p7) target bundleno = 7 (0x7), region = 90 }
 0x191   :  { %717 = vsyncpa [#allocation3], 1 }
 0x192   :  { %719 = vsyncpa [#allocation3 + $0x1], 1 }
 0x193   :  { %720 = vsyncpa [#allocation6], 1 }
 0x194   :  { %722 = vsyncpa [#allocation6 + $0x1], 1 }
 0x195   :  { %723 = vsyncpa [#allocation4], 1 }
 0x196   :  { %725 = vsyncpa [#allocation4 + $0x1], 1 }

</bundles_post_ra>
